<compile_context>
chip_gen: v7x
topology: tpu7x:2x2x1
jax: 0.10.0
libtpu: 0.0.40
codegen_flags: <defaults>
</compile_context>

<pallas_src>
import math
from functools import partial

import jax
import jax.numpy as jnp
from jax.experimental import pallas as pl
from jax.experimental.pallas import tpu as pltpu

# ---- model hyperparameters (small, consistent with ModelConfig) ----
B = 2          # batch
T = 8          # context_size
C = 32         # n_embed
N_HEAD = 4     # n_head
HS = C // N_HEAD
LN_EPS = 1e-5
NEG_INF = -1e30   # large-finite additive mask (robust vs -inf)


def _layernorm(v, w):
    # F.layer_norm(v, (C,), weight=w, bias=None, eps=1e-5); v: (N, C), w: (1, C), f32.
    mu = jnp.mean(v, axis=-1, keepdims=True)
    var = jnp.mean((v - mu) ** 2, axis=-1, keepdims=True)
    return (v - mu) * jax.lax.rsqrt(var + LN_EPS) * w


def _block_kernel(x_ref, bias_ref, ln1w_ref, ln2w_ref,
                  wqkv_ref, wproj_ref, wfc_ref, wfc2_ref, o_ref, *, b_blk):
    f32 = jnp.float32
    bf16 = jnp.bfloat16
    H = N_HEAD
    N = b_blk * T          # tokens handled by this grid step
    X = H * b_blk          # (head, batch) pairs handled by this grid step

    x = x_ref[...].reshape(N, C)          # (N, C) f32
    bias = bias_ref[...]                  # (T, T) additive causal mask, f32
    ln1w = ln1w_ref[...]                  # (1, C) f32 (kept 2-D: sublane broadcast)
    ln2w = ln2w_ref[...]                  # (1, C) f32

    # ---- LN1 on the flattened token slab (f32 VPU) ----
    h1 = _layernorm(x, ln1w)                                          # (N, C)

    # ---- fused QKV: ONE batched einsum over g = {q,k,v} x head ----
    # cast to bf16 BEFORE broadcasting over the 3*H axis.
    h1_g = jnp.broadcast_to(h1.astype(bf16)[None], (3 * H, N, C))
    qkv = jnp.einsum("gnc,gcd->gnd", h1_g, wqkv_ref[...],
                     preferred_element_type=f32)                      # (3H, N, HS)
    qkv = qkv.reshape(3, H, N, HS)
    # 1/sqrt(HS) is already folded into the q weights on the host.
    q = qkv[0].reshape(X, T, HS).astype(bf16)
    k = qkv[1].reshape(X, T, HS).astype(bf16)
    v = qkv[2].reshape(X, T, HS).astype(bf16)

    # ---- causal attention, all (head, batch) pairs batched together ----
    s = jnp.einsum("xqd,xkd->xqk", q, k, preferred_element_type=f32)  # (X, T, T)
    s = s + bias                                                      # additive causal mask
    m = jnp.max(s, axis=-1, keepdims=True)
    e = jnp.exp(s - m)
    p = e * pl.reciprocal(jnp.sum(e, axis=-1, keepdims=True), approx=True)

    pv = jnp.einsum("xqk,xkd->xqd", p.astype(bf16), v,
                    preferred_element_type=f32)                       # (X, T, HS)

    # ---- per-head output projection; head batch on BOTH operands, batch only
    #      on the activation -> no duplicated RHS weights.  Head merge = sum_h.
    pv_h = pv.reshape(H, N, HS).astype(bf16)
    proj = jnp.einsum("hnd,hdc->hnc", pv_h, wproj_ref[...],
                      preferred_element_type=f32)                     # (H, N, C)
    attn = jnp.sum(proj, axis=0)                                      # (N, C)

    x1 = x + attn                      # first residual (dropout_1/2 are identity)

    # ---- feed-forward on the flattened slab; hidden (N, 4C) is lane-dense ----
    h2 = _layernorm(x1, ln2w)
    ff = jnp.dot(h2.astype(bf16), wfc_ref[...], preferred_element_type=f32)   # (N, 4C)
    # exact GELU (PyTorch nn.GELU default, approximate='none')
    ff = 0.5 * ff * (1.0 + jax.lax.erf(ff * (1.0 / math.sqrt(2.0))))
    out = jnp.dot(ff.astype(bf16), wfc2_ref[...], preferred_element_type=f32)  # (N, C)

    o_ref[...] = (x1 + out).reshape(b_blk, T, C)     # second residual


def transformer_block(x, bias, ln1w2d, ln2w2d, wqkv_h, wproj_h, wfc, wfc2,
                      *, batch_parallel=False):
    """x: (B, T, C) f32.  batch_parallel=True -> grid=(B,) "parallel" (v7x, 2 TCs);
    default grid=(1,) whole-slab (right choice on single-TC v5e/v6e)."""
    assert x.shape == (B, T, C)
    b_blk = 1 if batch_parallel else B
    grid = (B // b_blk,)

    def resident(a):
        nd = a.ndim
        return pl.BlockSpec(a.shape, lambda b, nd=nd: (0,) * nd)

    x_spec = pl.BlockSpec((b_blk, T, C), lambda b: (b, 0, 0))

    return pl.pallas_call(
        partial(_block_kernel, b_blk=b_blk),
        out_shape=jax.ShapeDtypeStruct(x.shape, x.dtype),
        grid_spec=pltpu.PrefetchScalarGridSpec(
            num_scalar_prefetch=0,
            grid=grid,
            in_specs=[x_spec, resident(bias), resident(ln1w2d), resident(ln2w2d),
                      resident(wqkv_h), resident(wproj_h),
                      resident(wfc), resident(wfc2)],
            out_specs=x_spec,
        ),
        compiler_params=pltpu.CompilerParams(
            dimension_semantics=("parallel",) if batch_parallel else ("arbitrary",)),
    )(x, bias, ln1w2d, ln2w2d, wqkv_h, wproj_h, wfc, wfc2)


# ---- host-side (one-time) weight re-layout for the kernel ----
def _prep_qkv(wqkv):
    """(C, 3C) f32 -> (3*H, C, HS) bf16; q block pre-scaled by 1/sqrt(HS)."""
    def per_head(w):                       # (C, C) -> (H, C, HS)
        return w.reshape(C, N_HEAD, HS).transpose(1, 0, 2)
    wq = per_head(wqkv[:, 0 * C:1 * C] * (1.0 / math.sqrt(HS)))
    wk = per_head(wqkv[:, 1 * C:2 * C])
    wv = per_head(wqkv[:, 2 * C:3 * C])
    return jnp.concatenate([wq, wk, wv], axis=0).astype(jnp.bfloat16)


def _prep_proj(wproj):
    """(C, C) -> (H, HS, C) bf16; row block h*HS:(h+1)*HS belongs to head h."""
    return wproj.reshape(N_HEAD, HS, C).astype(jnp.bfloat16)


def reference(x, ln1w, wqkv, wproj, ln2w, wfc, wfc2):
    """Pure-JAX f32 reference mirroring the PyTorch forward (eval mode)."""
    def ln(v, w):
        mu = jnp.mean(v, axis=-1, keepdims=True)
        var = jnp.mean((v - mu) ** 2, axis=-1, keepdims=True)
        return (v - mu) * jax.lax.rsqrt(var + LN_EPS) * w

    h1 = ln(x, ln1w)
    qkv = h1 @ wqkv
    q, k, v = jnp.split(qkv, 3, axis=-1)
    q = q.reshape(B, T, N_HEAD, HS).transpose(0, 2, 1, 3)
    k = k.reshape(B, T, N_HEAD, HS).transpose(0, 2, 1, 3)
    v = v.reshape(B, T, N_HEAD, HS).transpose(0, 2, 1, 3)
    att = jnp.einsum("bhqd,bhkd->bhqk", q, k) / math.sqrt(HS)
    mask = jnp.tril(jnp.ones((T, T), bool))
    att = jnp.where(mask, att, -jnp.inf)
    att = jax.nn.softmax(att, axis=-1)
    out = jnp.einsum("bhqk,bhkd->bhqd", att, v)
    out = out.transpose(0, 2, 1, 3).reshape(B, T, C) @ wproj
    x1 = x + out
    h2 = ln(x1, ln2w)
    ff = h2 @ wfc
    ff = 0.5 * ff * (1.0 + jax.lax.erf(ff / math.sqrt(2.0)))
    ff = ff @ wfc2
    return x1 + ff


if __name__ == "__main__":
    key = jax.random.PRNGKey(0)
    ks = jax.random.split(key, 5)

    x = jax.random.normal(ks[0], (B, T, C), jnp.float32)

    # "PyTorch-equivalent" parameters, Linear weights stored as (in, out).
    wqkv = jax.random.normal(ks[1], (C, 3 * C), jnp.float32) * 0.1
    wproj = jax.random.normal(ks[2], (C, C), jnp.float32) * 0.1
    wfc = jax.random.normal(ks[3], (C, 4 * C), jnp.float32) * 0.1
    wfc2 = jax.random.normal(ks[4], (4 * C, C), jnp.float32) * 0.1
    ln1w = jnp.ones((C,), jnp.float32)   # LayerNorm weight init = ones
    ln2w = jnp.ones((C,), jnp.float32)
    # bias=False everywhere; nn.Dropout(0.0) is identity in eval/inference.

    # Kernel-layout parameters (head-stacked, bf16, NOT duplicated over batch)
    # and the precomputed additive causal bias.
    wqkv_h = _prep_qkv(wqkv)             # (3H, C, HS) bf16, q pre-scaled
    wproj_h = _prep_proj(wproj)          # (H, HS, C) bf16
    wfc_b = wfc.astype(jnp.bfloat16)
    wfc2_b = wfc2.astype(jnp.bfloat16)
    causal_bias = jnp.where(jnp.tril(jnp.ones((T, T), bool)),
                            0.0, NEG_INF).astype(jnp.float32)
    ln1w2d = ln1w[None, :]               # keep 2-D (1, C)
    ln2w2d = ln2w[None, :]

    ref = reference(x, ln1w, wqkv, wproj, ln2w, wfc, wfc2)

    # Default path: grid=(1,) whole-slab (single-TensorCore chips: v5e/v6e).
    out = transformer_block(x, causal_bias, ln1w2d, ln2w2d,
                            wqkv_h, wproj_h, wfc_b, wfc2_b,
                            batch_parallel=False)
    out = jax.block_until_ready(out)
    assert out.shape == (B, T, C)
    # bf16 matmul operands + approx reciprocal -> compare vs f32 reference loosely.
    assert jnp.allclose(out, ref, rtol=2e-2, atol=2e-2), (
        "single-step path mismatch, max abs err = "
        f"{float(jnp.max(jnp.abs(out - ref)))}")

    # Batch-parallel path: grid=(B,) with dimension_semantics=("parallel",) —
    # shards batches across TensorCores on v7x; correct (if slightly slower)
    # on single-TC chips too, so we validate it here as well.
    out_p = transformer_block(x, causal_bias, ln1w2d, ln2w2d,
                              wqkv_h, wproj_h, wfc_b, wfc2_b,
                              batch_parallel=True)
    out_p = jax.block_until_ready(out_p)
    assert jnp.allclose(out_p, ref, rtol=2e-2, atol=2e-2), (
        "batch-parallel path mismatch, max abs err = "
        f"{float(jnp.max(jnp.abs(out_p - ref)))}")

    print("KERNEL_OK")
</pallas_src>

<mosaic_0001>
module attributes {stable_mosaic.version = 11 : i64} {
  func.func @_block_kernel(%arg0: i32, %arg1: memref<2x8x32xf32, #tpu.memory_space<vmem>>, %arg2: memref<8x8xf32, #tpu.memory_space<vmem>>, %arg3: memref<1x32xf32, #tpu.memory_space<vmem>>, %arg4: memref<1x32xf32, #tpu.memory_space<vmem>>, %arg5: memref<12x32x8xbf16, #tpu.memory_space<vmem>>, %arg6: memref<4x8x32xbf16, #tpu.memory_space<vmem>>, %arg7: memref<32x128xbf16, #tpu.memory_space<vmem>>, %arg8: memref<128x32xbf16, #tpu.memory_space<vmem>>, %arg9: memref<2x8x32xf32, #tpu.memory_space<vmem>>) attributes {dimension_semantics = [#tpu.dimension_semantics<arbitrary>], iteration_bounds = array<i64: 1>, scalar_prefetch = 0 : i64, scratch_operands = 0 : i64, tpu.core_type = #tpu.core_type<tc>, window_params = [{transform_indices = @transform_0, window_bounds = array<i64: 2, 8, 32>}, {pipeline_mode = #tpu.pipeline_mode<synchronous>, transform_indices = @transform_1, window_bounds = array<i64: 8, 8>}, {pipeline_mode = #tpu.pipeline_mode<synchronous>, transform_indices = @transform_2, window_bounds = array<i64: 1, 32>}, {pipeline_mode = #tpu.pipeline_mode<synchronous>, transform_indices = @transform_3, window_bounds = array<i64: 1, 32>}, {pipeline_mode = #tpu.pipeline_mode<synchronous>, transform_indices = @transform_4, window_bounds = array<i64: 12, 32, 8>}, {pipeline_mode = #tpu.pipeline_mode<synchronous>, transform_indices = @transform_5, window_bounds = array<i64: 4, 8, 32>}, {pipeline_mode = #tpu.pipeline_mode<synchronous>, transform_indices = @transform_6, window_bounds = array<i64: 32, 128>}, {pipeline_mode = #tpu.pipeline_mode<synchronous>, transform_indices = @transform_7, window_bounds = array<i64: 128, 32>}, {transform_indices = @transform_8, window_bounds = array<i64: 2, 8, 32>}]} {
    %c0 = arith.constant 0 : index
    %c0_0 = arith.constant 0 : index
    %c0_1 = arith.constant 0 : index
    %0 = vector.load %arg1[%c0, %c0_0, %c0_1] : memref<2x8x32xf32, #tpu.memory_space<vmem>>, vector<2x8x32xf32>
    %1 = vector.shape_cast %0 : vector<2x8x32xf32> to vector<16x32xf32>
    %c0_2 = arith.constant 0 : index
    %c0_3 = arith.constant 0 : index
    %2 = vector.load %arg2[%c0_2, %c0_3] : memref<8x8xf32, #tpu.memory_space<vmem>>, vector<8x8xf32>
    %c0_4 = arith.constant 0 : index
    %c0_5 = arith.constant 0 : index
    %3 = vector.load %arg3[%c0_4, %c0_5] : memref<1x32xf32, #tpu.memory_space<vmem>>, vector<1x32xf32>
    %c0_6 = arith.constant 0 : index
    %c0_7 = arith.constant 0 : index
    %4 = vector.load %arg4[%c0_6, %c0_7] : memref<1x32xf32, #tpu.memory_space<vmem>>, vector<1x32xf32>
    %cst = arith.constant dense<0.000000e+00> : vector<16xf32>
    %5 = vector.multi_reduction <add>, %1, %cst [1] : vector<16x32xf32> to vector<16xf32>
    %6 = vector.shape_cast %5 : vector<16xf32> to vector<16x1xf32>
    %cst_8 = arith.constant 3.200000e+01 : f32
    %7 = vector.broadcast %cst_8 : f32 to vector<16x1xf32>
    %8 = arith.divf %6, %7 : vector<16x1xf32>
    %9 = vector.broadcast %8 : vector<16x1xf32> to vector<16x32xf32>
    %10 = arith.subf %1, %9 : vector<16x32xf32>
    %11 = arith.mulf %10, %10 : vector<16x32xf32>
    %cst_9 = arith.constant dense<0.000000e+00> : vector<16xf32>
    %12 = vector.multi_reduction <add>, %11, %cst_9 [1] : vector<16x32xf32> to vector<16xf32>
    %13 = vector.shape_cast %12 : vector<16xf32> to vector<16x1xf32>
    %cst_10 = arith.constant 3.200000e+01 : f32
    %14 = vector.broadcast %cst_10 : f32 to vector<16x1xf32>
    %15 = arith.divf %13, %14 : vector<16x1xf32>
    %16 = vector.broadcast %8 : vector<16x1xf32> to vector<16x32xf32>
    %17 = arith.subf %1, %16 : vector<16x32xf32>
    %cst_11 = arith.constant 9.99999974E-6 : f32
    %18 = vector.broadcast %cst_11 : f32 to vector<16x1xf32>
    %19 = arith.addf %15, %18 : vector<16x1xf32>
    %20 = math.rsqrt %19 : vector<16x1xf32>
    %21 = vector.broadcast %20 : vector<16x1xf32> to vector<16x32xf32>
    %22 = arith.mulf %17, %21 : vector<16x32xf32>
    %23 = vector.broadcast %3 : vector<1x32xf32> to vector<16x32xf32>
    %24 = arith.mulf %22, %23 : vector<16x32xf32>
    %25 = arith.truncf %24 : vector<16x32xf32> to vector<16x32xbf16>
    %26 = vector.shape_cast %25 : vector<16x32xbf16> to vector<1x16x32xbf16>
    %27 = vector.shape_cast %26 : vector<1x16x32xbf16> to vector<1x16x32xbf16>
    %28 = vector.broadcast %27 : vector<1x16x32xbf16> to vector<12x16x32xbf16>
    %c0_12 = arith.constant 0 : index
    %c0_13 = arith.constant 0 : index
    %c0_14 = arith.constant 0 : index
    %29 = vector.load %arg5[%c0_12, %c0_13, %c0_14] : memref<12x32x8xbf16, #tpu.memory_space<vmem>>, vector<12x32x8xbf16>
    "tpu.trace_start"() <{level = 10 : i32, message = "gnc,gcd->gnd"}> : () -> ()
    %cst_15 = arith.constant dense<0.000000e+00> : vector<12x16x8xf32>
    %30 = tpu.matmul %28, %29, %cst_15 {dimension_numbers = #tpu.dot_dimension_numbers<[2], [1], [1], [2], [0, 0, 0, 1, 1, 2], [0], [0]>} : vector<12x16x32xbf16>, vector<12x32x8xbf16>, vector<12x16x8xf32> -> vector<12x16x8xf32>
    "tpu.trace_stop"() : () -> ()
    %31 = vector.shape_cast %30 : vector<12x16x8xf32> to vector<3x4x16x8xf32>
    %32 = vector.extract_strided_slice %31 {offsets = [0, 0, 0, 0], sizes = [1, 4, 16, 8], strides = [1, 1, 1, 1]} : vector<3x4x16x8xf32> to vector<1x4x16x8xf32>
    %33 = vector.shape_cast %32 : vector<1x4x16x8xf32> to vector<4x16x8xf32>
    %34 = vector.shape_cast %33 : vector<4x16x8xf32> to vector<8x8x8xf32>
    %35 = arith.truncf %34 : vector<8x8x8xf32> to vector<8x8x8xbf16>
    %36 = vector.extract_strided_slice %31 {offsets = [1, 0, 0, 0], sizes = [1, 4, 16, 8], strides = [1, 1, 1, 1]} : vector<3x4x16x8xf32> to vector<1x4x16x8xf32>
    %37 = vector.shape_cast %36 : vector<1x4x16x8xf32> to vector<4x16x8xf32>
    %38 = vector.shape_cast %37 : vector<4x16x8xf32> to vector<8x8x8xf32>
    %39 = arith.truncf %38 : vector<8x8x8xf32> to vector<8x8x8xbf16>
    %40 = vector.extract_strided_slice %31 {offsets = [2, 0, 0, 0], sizes = [1, 4, 16, 8], strides = [1, 1, 1, 1]} : vector<3x4x16x8xf32> to vector<1x4x16x8xf32>
    %41 = vector.shape_cast %40 : vector<1x4x16x8xf32> to vector<4x16x8xf32>
    %42 = vector.shape_cast %41 : vector<4x16x8xf32> to vector<8x8x8xf32>
    %43 = arith.truncf %42 : vector<8x8x8xf32> to vector<8x8x8xbf16>
    "tpu.trace_start"() <{level = 10 : i32, message = "xqd,xkd->xqk"}> : () -> ()
    %cst_16 = arith.constant dense<0.000000e+00> : vector<8x8x8xf32>
    %44 = tpu.matmul %35, %39, %cst_16 {dimension_numbers = #tpu.dot_dimension_numbers<[2], [2], [1], [1], [0, 0, 0, 1, 1, 1], [0], [0]>} : vector<8x8x8xbf16>, vector<8x8x8xbf16>, vector<8x8x8xf32> -> vector<8x8x8xf32>
    "tpu.trace_stop"() : () -> ()
    %45 = vector.shape_cast %2 : vector<8x8xf32> to vector<1x8x8xf32>
    %46 = vector.broadcast %45 : vector<1x8x8xf32> to vector<8x8x8xf32>
    %47 = arith.addf %44, %46 : vector<8x8x8xf32>
    %cst_17 = arith.constant dense<0xFF800000> : vector<8x8xf32>
    %48 = vector.multi_reduction <maximumf>, %47, %cst_17 [2] : vector<8x8x8xf32> to vector<8x8xf32>
    %49 = vector.shape_cast %48 : vector<8x8xf32> to vector<8x8x1xf32>
    %50 = vector.broadcast %49 : vector<8x8x1xf32> to vector<8x8x8xf32>
    %51 = arith.subf %47, %50 : vector<8x8x8xf32>
    %52 = math.exp %51 : vector<8x8x8xf32>
    %cst_18 = arith.constant dense<0.000000e+00> : vector<8x8xf32>
    %53 = vector.multi_reduction <add>, %52, %cst_18 [2] : vector<8x8x8xf32> to vector<8x8xf32>
    %54 = vector.shape_cast %53 : vector<8x8xf32> to vector<8x8x1xf32>
    %55 = tpu.reciprocal %54 {approx = true} : vector<8x8x1xf32> -> vector<8x8x1xf32>
    %56 = vector.broadcast %55 : vector<8x8x1xf32> to vector<8x8x8xf32>
    %57 = arith.mulf %52, %56 : vector<8x8x8xf32>
    %58 = arith.truncf %57 : vector<8x8x8xf32> to vector<8x8x8xbf16>
    "tpu.trace_start"() <{level = 10 : i32, message = "xqk,xkd->xqd"}> : () -> ()
    %cst_19 = arith.constant dense<0.000000e+00> : vector<8x8x8xf32>
    %59 = tpu.matmul %58, %43, %cst_19 {dimension_numbers = #tpu.dot_dimension_numbers<[2], [1], [1], [2], [0, 0, 0, 1, 1, 2], [0], [0]>} : vector<8x8x8xbf16>, vector<8x8x8xbf16>, vector<8x8x8xf32> -> vector<8x8x8xf32>
    "tpu.trace_stop"() : () -> ()
    %60 = vector.shape_cast %59 : vector<8x8x8xf32> to vector<4x16x8xf32>
    %61 = arith.truncf %60 : vector<4x16x8xf32> to vector<4x16x8xbf16>
    %c0_20 = arith.constant 0 : index
    %c0_21 = arith.constant 0 : index
    %c0_22 = arith.constant 0 : index
    %62 = vector.load %arg6[%c0_20, %c0_21, %c0_22] : memref<4x8x32xbf16, #tpu.memory_space<vmem>>, vector<4x8x32xbf16>
    "tpu.trace_start"() <{level = 10 : i32, message = "hnd,hdc->hnc"}> : () -> ()
    %cst_23 = arith.constant dense<0.000000e+00> : vector<4x16x32xf32>
    %63 = tpu.matmul %61, %62, %cst_23 {dimension_numbers = #tpu.dot_dimension_numbers<[2], [1], [1], [2], [0, 0, 0, 1, 1, 2], [0], [0]>} : vector<4x16x8xbf16>, vector<4x8x32xbf16>, vector<4x16x32xf32> -> vector<4x16x32xf32>
    "tpu.trace_stop"() : () -> ()
    %cst_24 = arith.constant dense<0.000000e+00> : vector<16x32xf32>
    %64 = vector.multi_reduction <add>, %63, %cst_24 [0] : vector<4x16x32xf32> to vector<16x32xf32>
    %65 = arith.addf %1, %64 : vector<16x32xf32>
    %cst_25 = arith.constant dense<0.000000e+00> : vector<16xf32>
    %66 = vector.multi_reduction <add>, %65, %cst_25 [1] : vector<16x32xf32> to vector<16xf32>
    %67 = vector.shape_cast %66 : vector<16xf32> to vector<16x1xf32>
    %cst_26 = arith.constant 3.200000e+01 : f32
    %68 = vector.broadcast %cst_26 : f32 to vector<16x1xf32>
    %69 = arith.divf %67, %68 : vector<16x1xf32>
    %70 = vector.broadcast %69 : vector<16x1xf32> to vector<16x32xf32>
    %71 = arith.subf %65, %70 : vector<16x32xf32>
    %72 = arith.mulf %71, %71 : vector<16x32xf32>
    %cst_27 = arith.constant dense<0.000000e+00> : vector<16xf32>
    %73 = vector.multi_reduction <add>, %72, %cst_27 [1] : vector<16x32xf32> to vector<16xf32>
    %74 = vector.shape_cast %73 : vector<16xf32> to vector<16x1xf32>
    %cst_28 = arith.constant 3.200000e+01 : f32
    %75 = vector.broadcast %cst_28 : f32 to vector<16x1xf32>
    %76 = arith.divf %74, %75 : vector<16x1xf32>
    %77 = vector.broadcast %69 : vector<16x1xf32> to vector<16x32xf32>
    %78 = arith.subf %65, %77 : vector<16x32xf32>
    %cst_29 = arith.constant 9.99999974E-6 : f32
    %79 = vector.broadcast %cst_29 : f32 to vector<16x1xf32>
    %80 = arith.addf %76, %79 : vector<16x1xf32>
    %81 = math.rsqrt %80 : vector<16x1xf32>
    %82 = vector.broadcast %81 : vector<16x1xf32> to vector<16x32xf32>
    %83 = arith.mulf %78, %82 : vector<16x32xf32>
    %84 = vector.broadcast %4 : vector<1x32xf32> to vector<16x32xf32>
    %85 = arith.mulf %83, %84 : vector<16x32xf32>
    %86 = arith.truncf %85 : vector<16x32xf32> to vector<16x32xbf16>
    %c0_30 = arith.constant 0 : index
    %c0_31 = arith.constant 0 : index
    %87 = vector.load %arg7[%c0_30, %c0_31] : memref<32x128xbf16, #tpu.memory_space<vmem>>, vector<32x128xbf16>
    %cst_32 = arith.constant dense<0.000000e+00> : vector<16x128xf32>
    %88 = tpu.matmul %86, %87, %cst_32 {dimension_numbers = #tpu.dot_dimension_numbers<[1], [0], [0], [1], [0, 0, 1, 1], [], []>} : vector<16x32xbf16>, vector<32x128xbf16>, vector<16x128xf32> -> vector<16x128xf32>
    %cst_33 = arith.constant 5.000000e-01 : f32
    %89 = vector.broadcast %cst_33 : f32 to vector<16x128xf32>
    %90 = arith.mulf %89, %88 : vector<16x128xf32>
    %cst_34 = arith.constant 0.707106769 : f32
    %91 = vector.broadcast %cst_34 : f32 to vector<16x128xf32>
    %92 = arith.mulf %88, %91 : vector<16x128xf32>
    %93 = math.erf %92 : vector<16x128xf32>
    %cst_35 = arith.constant 1.000000e+00 : f32
    %94 = vector.broadcast %cst_35 : f32 to vector<16x128xf32>
    %95 = arith.addf %94, %93 : vector<16x128xf32>
    %96 = arith.mulf %90, %95 : vector<16x128xf32>
    %97 = arith.truncf %96 : vector<16x128xf32> to vector<16x128xbf16>
    %c0_36 = arith.constant 0 : index
    %c0_37 = arith.constant 0 : index
    %98 = vector.load %arg8[%c0_36, %c0_37] : memref<128x32xbf16, #tpu.memory_space<vmem>>, vector<128x32xbf16>
    %cst_38 = arith.constant dense<0.000000e+00> : vector<16x32xf32>
    %99 = tpu.matmul %97, %98, %cst_38 {dimension_numbers = #tpu.dot_dimension_numbers<[1], [0], [0], [1], [0, 0, 1, 1], [], []>} : vector<16x128xbf16>, vector<128x32xbf16>, vector<16x32xf32> -> vector<16x32xf32>
    %100 = arith.addf %65, %99 : vector<16x32xf32>
    %101 = vector.shape_cast %100 : vector<16x32xf32> to vector<2x8x32xf32>
    %c0_39 = arith.constant 0 : index
    %c0_40 = arith.constant 0 : index
    %c0_41 = arith.constant 0 : index
    %102 = vector.load %arg9[%c0_39, %c0_40, %c0_41] : memref<2x8x32xf32, #tpu.memory_space<vmem>>, vector<2x8x32xf32>
    tpu.vector_store %arg9[%c0_39, %c0_40, %c0_41], %101 {strides = array<i32>} : memref<2x8x32xf32, #tpu.memory_space<vmem>>, vector<2x8x32xf32>,
    return
  }
  func.func @transform_0(%arg0: i32) -> (i32, i32, i32) {
    %c0_i32 = arith.constant 0 : i32
    %c0_i32_0 = arith.constant 0 : i32
    %c0_i32_1 = arith.constant 0 : i32
    return %arg0, %c0_i32, %c0_i32_0 : i32, i32, i32
  }
  func.func @transform_1(%arg0: i32) -> (i32, i32) {
    %c0_i32 = arith.constant 0 : i32
    %c0_i32_0 = arith.constant 0 : i32
    %c0_i32_1 = arith.constant 0 : i32
    return %c0_i32, %c0_i32_0 : i32, i32
  }
  func.func @transform_2(%arg0: i32) -> (i32, i32) {
    %c0_i32 = arith.constant 0 : i32
    %c0_i32_0 = arith.constant 0 : i32
    %c0_i32_1 = arith.constant 0 : i32
    return %c0_i32, %c0_i32_0 : i32, i32
  }
  func.func @transform_3(%arg0: i32) -> (i32, i32) {
    %c0_i32 = arith.constant 0 : i32
    %c0_i32_0 = arith.constant 0 : i32
    %c0_i32_1 = arith.constant 0 : i32
    return %c0_i32, %c0_i32_0 : i32, i32
  }
  func.func @transform_4(%arg0: i32) -> (i32, i32, i32) {
    %c0_i32 = arith.constant 0 : i32
    %c0_i32_0 = arith.constant 0 : i32
    %c0_i32_1 = arith.constant 0 : i32
    %c0_i32_2 = arith.constant 0 : i32
    return %c0_i32, %c0_i32_0, %c0_i32_1 : i32, i32, i32
  }
  func.func @transform_5(%arg0: i32) -> (i32, i32, i32) {
    %c0_i32 = arith.constant 0 : i32
    %c0_i32_0 = arith.constant 0 : i32
    %c0_i32_1 = arith.constant 0 : i32
    %c0_i32_2 = arith.constant 0 : i32
    return %c0_i32, %c0_i32_0, %c0_i32_1 : i32, i32, i32
  }
  func.func @transform_6(%arg0: i32) -> (i32, i32) {
    %c0_i32 = arith.constant 0 : i32
    %c0_i32_0 = arith.constant 0 : i32
    %c0_i32_1 = arith.constant 0 : i32
    return %c0_i32, %c0_i32_0 : i32, i32
  }
  func.func @transform_7(%arg0: i32) -> (i32, i32) {
    %c0_i32 = arith.constant 0 : i32
    %c0_i32_0 = arith.constant 0 : i32
    %c0_i32_1 = arith.constant 0 : i32
    return %c0_i32, %c0_i32_0 : i32, i32
  }
  func.func @transform_8(%arg0: i32) -> (i32, i32, i32) {
    %c0_i32 = arith.constant 0 : i32
    %c0_i32_0 = arith.constant 0 : i32
    %c0_i32_1 = arith.constant 0 : i32
    return %arg0, %c0_i32, %c0_i32_0 : i32, i32, i32
  }
}

</mosaic_0001>

<bundles_post_ra>
// kernel: tpu_custom_call.1
= control target key start
LH: loop header
LB: loop body
LE: loop exit
PB: predicated region body
PF: predicated region fallthrough
CT: control target
= control target key end

     0   :  { %vm36_vm0 = vcmask 261120   ;;  %s3073_s0 = inlined_call_operand.vmem [shape: f32[2,8,32], index: 0, kind: input, shape index: {}]   ;;  %s3074_s1 = inlined_call_operand.vmem [shape: f32[8,8], index: 1, kind: input, shape index: {}]   ;;  %s3075_s2 = inlined_call_operand.vmem [shape: f32[1,32], index: 2, kind: input, shape index: {}]   ;;  %s3076_s3 = inlined_call_operand.vmem [shape: f32[1,32], index: 3, kind: input, shape index: {}]   ;;  %s3077_s4 = inlined_call_operand.vmem [shape: bf16[12,32,8], index: 4, kind: input, shape index: {}]   ;;  %s3078_s5 = inlined_call_operand.vmem [shape: bf16[4,8,32], index: 5, kind: input, shape index: {}]   ;;  %s3079_s6 = inlined_call_operand.vmem [shape: bf16[32,128], index: 6, kind: input, shape index: {}]   ;;  %s3080_s7 = inlined_call_operand.vmem [shape: bf16[128,32], index: 7, kind: input, shape index: {}]   ;;  %s3081_s8 = inlined_call_operand.hbm [shape: f32[2,8,32], index: 8, kind: output, shape index: {}]  }
   0x1   :  { %v31_v0 = vld [vmem:[%s3073_s0] sm:$0xff]  ;;  %v32_v1 = vld [vmem:[%s3073_s0 + $0x8] sm:$0xff] }
   0x2   :  { %v37_v2 = vsel %vm36_vm0, %v31_v0, 0.0  ;;  %v40_v3 = vsel %vm36_vm0, %v32_v1, 0.0 }
   0x3   :  { %38 = vadd.xlane.f32.xlu0 %v37_v2 }
   0x7   :  { %41 = vadd.xlane.f32.xlu0 %v40_v3 }
   0x8   :  { %13 = vsyncpa [#allocation3], 0  ;;  %v2467_v14 = vld [vmem:[%s3077_s4] sm:$0xff]   ;;  %v2468_v15 = vld [vmem:[%s3077_s4 + $0x30] sm:$0xff]   ;;  %v2571_v16 = vmov 0.0   ;;  %vm2572_vm1 = vmmov 0  }
   0x9   :  { %2218 = vmatprep.subr.bf16.mxu0 %v2571_v16  ;;  %2242 = vmatprep.subr.bf16.mxu1 %v2571_v16  ;;  %v2469_v17 = vld [vmem:[%s3077_s4 + $0x8] sm:$0xff]   ;;  %v2470_v18 = vld [vmem:[%s3077_s4 + $0x38] sm:$0xff]   ;;  %v2061_v28 = vld [vmem:[%s3075_s2] ss:$0 sm:$0xff]  ;;  %vm784_vm2 = vcmask 64512   ;;  %vm1252_vm3 = vcmask 1043456  }
   0xa   :  { %2219 = vmatpush3.bf16.msra.mxu0 %v2467_v14  ;;  %2243 = vmatpush3.bf16.msra.mxu1 %v2468_v15  ;;  %v2471_v32 = vld [vmem:[%s3077_s4 + $0x10] sm:$0xff]   ;;  %v2473_v35 = vld [vmem:[%s3077_s4 + $0x18] sm:$0xff]   ;;  %v2475_v37 = vld [vmem:[%s3077_s4 + $0x20] sm:$0xff]  }
   0xb   :  { %2220 = vmatprep.subr.bf16.mxu0 %v2571_v16  ;;  %2244 = vmatprep.subr.bf16.mxu1 %v2571_v16  ;;  %v2472_v33 = vld [vmem:[%s3077_s4 + $0x50] sm:$0xff]   ;;  %v2474_v36 = vld [vmem:[%s3077_s4 + $0x58] sm:$0xff]   ;;  %v2477_v39 = vld [vmem:[%s3077_s4 + $0x28] sm:$0xff]  }
   0xc   :  { %2222 = vmatprep.mubr.msk.bf16.mxu0 %vm2572_vm1, %v2571_v16  ;;  %2246 = vmatprep.mubr.msk.bf16.mxu1 %vm2572_vm1, %v2571_v16  ;;  %v2476_v38 = vld [vmem:[%s3077_s4 + $0x70] sm:$0xff]   ;;  %v2478_v40 = vld [vmem:[%s3077_s4 + $0x78] sm:$0xff]   ;;  %v2479_v41 = vld [vmem:[%s3077_s4 + $0x40] sm:$0xff]  }
   0xd   :  { %v2480_v42 = vld [vmem:[%s3077_s4 + $0x90] sm:$0xff]   ;;  %v2481_v43 = vld [vmem:[%s3077_s4 + $0x48] sm:$0xff]   ;;  %v2482_v44 = vld [vmem:[%s3077_s4 + $0x98] sm:$0xff]  }
   0xe   :  { %2221 = vmatpush3.bf16.msra.mxu0 %v2469_v17  ;;  %2245 = vmatpush3.bf16.msra.mxu1 %v2470_v18  ;;  %v2483_v45 = vld [vmem:[%s3077_s4 + $0x60] sm:$0xff]   ;;  %v2484_v46 = vld [vmem:[%s3077_s4 + $0xb0] sm:$0xff]   ;;  %v2485_v47 = vld [vmem:[%s3077_s4 + $0x68] sm:$0xff]  }
   0xf   :  { %2226 = vmatprep.subr.bf16.mxu0 %v2571_v16  ;;  %2258 = vmatprep.subr.bf16.mxu1 %v2571_v16  ;;  %v2486_v48 = vld [vmem:[%s3077_s4 + $0xb8] sm:$0xff]   ;;  %v2487_v49 = vld [vmem:[%s3077_s4 + $0x80] sm:$0xff]   ;;  %v2488_v50 = vld [vmem:[%s3077_s4 + $0x88] sm:$0xff]  }
  0x10   :  { %v2489_v51 = vld [vmem:[%s3077_s4 + $0xa0] sm:$0xff]   ;;  %v2490_v52 = vld [vmem:[%s3077_s4 + $0xa8] sm:$0xff]  }
  0x90   :  { %v39_v4 = vpop.xlane.xlu0 %38 }
  0x91   :  { %v44_v5 = vmul.f32 0.03125, %v39_v4 }
  0x93   :  { %v46_v6 = vsub.f32 %v31_v0, %v44_v5 }
  0x94   :  { %v42_v7 = vpop.xlane.xlu0 %41 }
  0x95   :  { %v45_v8 = vmul.f32 0.03125, %v42_v7  ;;  %v48_v9 = vmul.f32 %v46_v6, %v46_v6 }
  0x97   :  { %v47_v10 = vsub.f32 %v32_v1, %v45_v8  ;;  %v50_v11 = vsel %vm36_vm0, %v48_v9, 0.0 }
  0x98   :  { %51 = vadd.xlane.f32.xlu1 %v50_v11 }
  0x99   :  { %v49_v12 = vmul.f32 %v47_v10, %v47_v10 }
  0x9b   :  { %v53_v13 = vsel %vm36_vm0, %v49_v12, 0.0 }
  0x9c   :  { %54 = vadd.xlane.f32.xlu1 %v53_v13 }
 0x125   :  { %v52_v19 = vpop.xlane.xlu1 %51 }
 0x126   :  { %v56_v20 = vmul.f32 0.03125, %v52_v19 }
 0x128   :  { %v58_v21 = vadd.f32 1e-05, %v56_v20 }
 0x129   :  { %v55_v22 = vpop.xlane.xlu1 %54 }
 0x12a   :  { %2501 = vrsqrt.f32 %v58_v21  ;;  %v57_v23 = vmul.f32 0.03125, %v55_v22 }
 0x12c   :  { %v59_v24 = vadd.f32 1e-05, %v57_v23 }
 0x12e   :  { %2503 = vrsqrt.f32 %v59_v24 }
 0x134   :  { %v2502_v25 = vpop.eup %2501 }
 0x135   :  { %v62_v26 = vmul.f32 %v2502_v25, %v46_v6 }
 0x137   :  { %v70_v30 = vmul.f32 %v2061_v28, %v62_v26 }
 0x138   :  { %v2504_v27 = vpop.eup %2503 }
 0x139   :  { %v63_v29 = vmul.f32 %v2504_v27, %v47_v10 }
 0x13b   :  { %v71_v31 = vmul.f32 %v2061_v28, %v63_v29 }
 0x13d   :  { %v2662_v34 = vpack.c.bf16 %v71_v31, %v70_v30 }
 0x13f   :  { %2223 = vmatmul.mubr.msk.bf16.vlgmr.msra.gmra.mrb[0].mxu0 %vm36_vm0, %v2662_v34  ;;  %2247 = vmatmul.mubr.msk.bf16.vlgmr.msra.gmra.mrb[0].mxu1 %vm36_vm0, %v2662_v34 }
 0x140   :  { %2227 = vmatpush3.bf16.msra.mxu0 %v2471_v32  ;;  %2259 = vmatpush3.bf16.msra.mxu1 %v2472_v33 }
 0x141   :  { %2228 = vmatprep.subr.bf16.mxu0 %v2571_v16  ;;  %2260 = vmatprep.subr.bf16.mxu1 %v2571_v16 }
 0x142   :  { %2230 = vmatprep.mubr.msk.bf16.mxu0 %vm2572_vm1, %v2571_v16  ;;  %2262 = vmatprep.mubr.msk.bf16.mxu1 %vm2572_vm1, %v2571_v16 }
 0x144   :  { %2229 = vmatpush3.bf16.msra.mxu0 %v2473_v35  ;;  %2261 = vmatpush3.bf16.msra.mxu1 %v2474_v36 }
 0x145   :  { %2234 = vmatprep.subr.bf16.mxu0 %v2571_v16  ;;  %2274 = vmatprep.subr.bf16.mxu1 %v2571_v16 }
 0x147   :  { %2231 = vmatmul.mubr.msk.bf16.vlgmr.msra.gmra.mrb[4].mxu0 %vm36_vm0, %v2662_v34  ;;  %2263 = vmatmul.mubr.msk.bf16.vlgmr.msra.gmra.mrb[4].mxu1 %vm36_vm0, %v2662_v34 }
 0x148   :  { %2235 = vmatpush3.bf16.msra.mxu0 %v2475_v37  ;;  %2275 = vmatpush3.bf16.msra.mxu1 %v2476_v38 }
 0x149   :  { %2236 = vmatprep.subr.bf16.mxu0 %v2571_v16  ;;  %2276 = vmatprep.subr.bf16.mxu1 %v2571_v16 }
 0x14a   :  { %2238 = vmatprep.mubr.msk.bf16.mxu0 %vm2572_vm1, %v2571_v16  ;;  %2278 = vmatprep.mubr.msk.bf16.mxu1 %vm2572_vm1, %v2571_v16 }
 0x14c   :  { %2237 = vmatpush3.bf16.msra.mxu0 %v2477_v39  ;;  %2277 = vmatpush3.bf16.msra.mxu1 %v2478_v40 }
 0x14d   :  { %2250 = vmatprep.subr.bf16.mxu0 %v2571_v16  ;;  %2290 = vmatprep.subr.bf16.mxu1 %v2571_v16 }
 0x14f   :  { %2239 = vmatmul.mubr.msk.bf16.vlgmr.msra.gmra.mrb[8].mxu0 %vm36_vm0, %v2662_v34  ;;  %2279 = vmatmul.mubr.msk.bf16.vlgmr.msra.gmra.mrb[8].mxu1 %vm36_vm0, %v2662_v34 }
 0x150   :  { %2251 = vmatpush3.bf16.msra.mxu0 %v2479_v41  ;;  %2291 = vmatpush3.bf16.msra.mxu1 %v2480_v42 }
 0x151   :  { %2252 = vmatprep.subr.bf16.mxu0 %v2571_v16  ;;  %2292 = vmatprep.subr.bf16.mxu1 %v2571_v16 }
 0x152   :  { %2254 = vmatprep.mubr.msk.bf16.mxu0 %vm2572_vm1, %v2571_v16  ;;  %2294 = vmatprep.mubr.msk.bf16.mxu1 %vm2572_vm1, %v2571_v16 }
 0x154   :  { %2253 = vmatpush3.bf16.msra.mxu0 %v2481_v43  ;;  %2293 = vmatpush3.bf16.msra.mxu1 %v2482_v44 }
 0x155   :  { %2266 = vmatprep.subr.bf16.mxu0 %v2571_v16  ;;  %2306 = vmatprep.subr.bf16.mxu1 %v2571_v16 }
 0x157   :  { %2255 = vmatmul.mubr.msk.bf16.vlgmr.msra.gmra.mrb[12].mxu0 %vm36_vm0, %v2662_v34  ;;  %2295 = vmatmul.mubr.msk.bf16.vlgmr.msra.gmra.mrb[12].mxu1 %vm36_vm0, %v2662_v34 }
 0x158   :  { %2267 = vmatpush3.bf16.msra.mxu0 %v2483_v45  ;;  %2307 = vmatpush3.bf16.msra.mxu1 %v2484_v46 }
 0x159   :  { %2268 = vmatprep.subr.bf16.mxu0 %v2571_v16  ;;  %2308 = vmatprep.subr.bf16.mxu1 %v2571_v16 }
 0x15a   :  { %2270 = vmatprep.mubr.msk.bf16.mxu0 %vm2572_vm1, %v2571_v16  ;;  %2310 = vmatprep.mubr.msk.bf16.mxu1 %vm2572_vm1, %v2571_v16 }
 0x15c   :  { %2269 = vmatpush3.bf16.msra.mxu0 %v2485_v47  ;;  %2309 = vmatpush3.bf16.msra.mxu1 %v2486_v48 }
 0x15d   :  { %2282 = vmatprep.subr.bf16.mxu0 %v2571_v16  ;;  %2320 = vmatprep.subr.bf16.mxu1 %v2571_v16 }
 0x15f   :  { %2271 = vmatmul.mubr.msk.bf16.vlgmr.msra.gmra.mrb[16].mxu0 %vm36_vm0, %v2662_v34  ;;  %2311 = vmatmul.mubr.msk.bf16.vlgmr.msra.gmra.mrb[16].mxu1 %vm36_vm0, %v2662_v34 }
 0x160   :  { %2283 = vmatpush3.bf16.msra.mxu0 %v2487_v49  ;;  %2286 = vmatprep.mubr.msk.bf16.mxu0 %vm2572_vm1, %v2571_v16 }
 0x161   :  { %2284 = vmatprep.subr.bf16.mxu0 %v2571_v16  ;;  %2322 = vmatprep.mubr.msk.bf16.mxu1 %vm2572_vm1, %v2571_v16 }
 0x164   :  { %2285 = vmatpush3.bf16.msra.mxu0 %v2488_v50 }
 0x165   :  { %2298 = vmatprep.subr.bf16.mxu0 %v2571_v16 }
 0x167   :  { %2287 = vmatmul.mubr.msk.bf16.vlgmr.msra.gmra.mrb[20].mxu0 %vm36_vm0, %v2662_v34 }
 0x168   :  { %2299 = vmatpush3.bf16.msra.mxu0 %v2489_v51  ;;  %2302 = vmatprep.mubr.msk.bf16.mxu0 %vm2572_vm1, %v2571_v16 }
 0x169   :  { %2300 = vmatprep.subr.bf16.mxu0 %v2571_v16 }
 0x16c   :  { %2301 = vmatpush3.bf16.msra.mxu0 %v2490_v52 }
 0x16d   :  { %2314 = vmatprep.subr.bf16.mxu0 %v2571_v16 }
 0x16f   :  { %2303 = vmatmul.mubr.msk.bf16.vlgmr.msra.gmra.mrb[24].mxu0 %vm36_vm0, %v2662_v34 }
 0x170   :  { %2316 = vmatprep.mubr.msk.bf16.mxu0 %vm2572_vm1, %v2571_v16 }
 0x212   :  { %v170_v53 = vpop.f32.mrb[0].mxu0  ;;  %v2786_v54 = vpop.f32.mrb[0].mxu1 }
 0x213   :  { %v2224_v55 = vpop.f32.mrb[1].mxu0  ;;  %v2248_v56 = vpop.f32.mrb[1].mxu1  ;;  %v760_v29 = vpack.c.bf16 %v170_v53, %v170_v53 }
 0x214   :  { %v173_v57 = vpop.f32.mrb[2].mxu0  ;;  %v2788_v58 = vpop.f32.mrb[2].mxu1 }
 0x215   :  { %v2225_v59 = vpop.f32.mrb[3].mxu0  ;;  %v2249_v60 = vpop.f32.mrb[3].mxu1  ;;  %v761_v35 = vpack.c.bf16 %v173_v57, %v173_v57 }
 0x21a   :  { %v2790_v61 = vpop.f32.mrb[4].mxu0  ;;  %v435_v62 = vpop.f32.mrb[4].mxu1 }
 0x21b   :  { %v2232_v63 = vpop.f32.mrb[5].mxu0  ;;  %v2264_v0 = vpop.f32.mrb[5].mxu1  ;;  %v770_v26 = vpack.c.bf16 %v435_v62, %v435_v62  ;;  %v762_v42 = vpack.c.bf16 %v2790_v61, %v2790_v61 }
 0x21c   :  { %v2792_v1 = vpop.f32.mrb[6].mxu0  ;;  %v438_v2 = vpop.f32.mrb[6].mxu1  ;;  %v766_v63 = vpack.c.bf16 %v2786_v54, %v2786_v54  ;;  %v33_v54 = vld [vmem:[%s3074_s1] sm:$0xff] }
 0x21d   :  { %v2233_v3 = vpop.f32.mrb[7].mxu0  ;;  %v2265_v4 = vpop.f32.mrb[7].mxu1  ;;  %v771_v30 = vpack.c.bf16 %v438_v2, %v438_v2  ;;  %v881_v36 = vsel %vm784_vm2, %v770_v26, 0  ;;  %v763_v46 = vpack.c.bf16 %v2792_v1, %v2792_v1  ;;  %v767_v1 = vpack.c.bf16 %v2788_v58, %v2788_v58 }
 0x21f   :  { %v927_v39 = vsel %vm784_vm2, %v771_v30, 0 }
 0x222   :  { %v2794_v5 = vpop.f32.mrb[8].mxu0  ;;  %v2796_v6 = vpop.f32.mrb[8].mxu1 }
 0x223   :  { %v2240_v7 = vpop.f32.mrb[9].mxu0  ;;  %v2280_v8 = vpop.f32.mrb[9].mxu1  ;;  %v774_v50 = vpack.c.bf16 %v2796_v6, %v2796_v6  ;;  %v764_v52 = vpack.c.bf16 %v2794_v5, %v2794_v5 }
 0x224   :  { %v2798_v9 = vpop.f32.mrb[10].mxu0  ;;  %v2800_v10 = vpop.f32.mrb[10].mxu1 }
 0x225   :  { %v2241_v11 = vpop.f32.mrb[11].mxu0  ;;  %v2281_v12 = vpop.f32.mrb[11].mxu1  ;;  %v775_v53 = vpack.c.bf16 %v2800_v10, %v2800_v10  ;;  %v1065_v57 = vsel %vm784_vm2, %v774_v50, 0  ;;  %v765_v59 = vpack.c.bf16 %v2798_v9, %v2798_v9 }
 0x227   :  { %v1111_v61 = vsel %vm784_vm2, %v775_v53, 0 }
 0x22a   :  { %v382_v13 = vpop.f32.mrb[12].mxu0  ;;  %v2802_v14 = vpop.f32.mrb[12].mxu1 }
 0x22b   :  { %v768_v15 = vpack.c.bf16 %v382_v13, %v382_v13  ;;  %v2256_v17 = vpop.f32.mrb[13].mxu0  ;;  %v2296_v18 = vpop.f32.mrb[13].mxu1 }
 0x22c   :  { %v385_v19 = vpop.f32.mrb[14].mxu0  ;;  %v2804_v20 = vpop.f32.mrb[14].mxu1 }
 0x22d   :  { %v789_v21 = vsel %vm784_vm2, %v768_v15, 0  ;;  %v769_v22 = vpack.c.bf16 %v385_v19, %v385_v19  ;;  %v2257_v23 = vpop.f32.mrb[15].mxu0  ;;  %v2297_v24 = vpop.f32.mrb[15].mxu1 }
 0x22e   :  { %2315 = vmatpush3.bf16.xpose.msra.mxu0 %v789_v21 }
 0x22f   :  { %v835_v25 = vsel %vm784_vm2, %v769_v22, 0  ;;  %2326 = vmatprep.subr.bf16.mxu0 %v2571_v16 }
 0x230   :  { %2321 = vmatpush3.bf16.xpose.msra.mxu1 %v835_v25 }
 0x231   :  { %2332 = vmatprep.subr.bf16.mxu1 %v2571_v16 }
 0x232   :  { %v488_v27 = vpop.f32.mrb[16].mxu0  ;;  %v2810_v28 = vpop.f32.mrb[16].mxu1 }
 0x233   :  { %v2272_v31 = vpop.f32.mrb[17].mxu0  ;;  %v2312_v32 = vpop.f32.mrb[17].mxu1  ;;  %v772_v40 = vpack.c.bf16 %v488_v27, %v488_v27 }
 0x234   :  { %v491_v33 = vpop.f32.mrb[18].mxu0  ;;  %v2812_v34 = vpop.f32.mrb[18].mxu1 }
 0x235   :  { %v2273_v37 = vpop.f32.mrb[19].mxu0  ;;  %v2313_v38 = vpop.f32.mrb[19].mxu1  ;;  %2317 = vmatmul.mubr.msk.bf16.vlgmr.msra.gmra.mrb[28].mxu0 %vm784_vm2, %v760_v29  ;;  %v773_v43 = vpack.c.bf16 %v491_v33, %v491_v33  ;;  %v973_v47 = vsel %vm784_vm2, %v772_v40, 0 }
 0x236   :  { %2327 = vmatpush3.bf16.xpose.msra.mxu0 %v881_v36  ;;  %2328 = vmatprep.mubr.msk.bf16.mxu0 %vm2572_vm1, %v2571_v16 }
 0x237   :  { %2323 = vmatmul.mubr.msk.bf16.vlgmr.msra.gmra.mrb[20].mxu1 %vm784_vm2, %v761_v35  ;;  %2338 = vmatprep.subr.bf16.mxu0 %v2571_v16  ;;  %v1019_v49 = vsel %vm784_vm2, %v773_v43, 0 }
 0x238   :  { %2333 = vmatpush3.bf16.xpose.msra.mxu1 %v927_v39  ;;  %2334 = vmatprep.mubr.msk.bf16.mxu1 %vm2572_vm1, %v2571_v16 }
 0x239   :  { %2344 = vmatprep.subr.bf16.mxu1 %v2571_v16 }
 0x23a   :  { %v594_v41 = vpop.f32.mrb[20].mxu0 }
 0x23b   :  { %v2288_v44 = vpop.f32.mrb[21].mxu0  ;;  %v776_v62 = vpack.c.bf16 %v594_v41, %v594_v41 }
 0x23c   :  { %v597_v45 = vpop.f32.mrb[22].mxu0 }
 0x23d   :  { %v2289_v48 = vpop.f32.mrb[23].mxu0  ;;  %2329 = vmatmul.mubr.msk.bf16.vlgmr.msra.gmra.mrb[32].mxu0 %vm784_vm2, %v762_v42  ;;  %v777_v0 = vpack.c.bf16 %v597_v45, %v597_v45  ;;  %v1254_v2 = vsel %vm1252_vm3, %v776_v62, 0 }
 0x23e   :  { %2339 = vmatpush3.bf16.xpose.msra.mxu0 %v973_v47  ;;  %2340 = vmatprep.mubr.msk.bf16.mxu0 %vm2572_vm1, %v2571_v16 }
 0x23f   :  { %2335 = vmatmul.mubr.msk.bf16.vlgmr.msra.gmra.mrb[24].mxu1 %vm784_vm2, %v763_v46  ;;  %2350 = vmatprep.subr.bf16.mxu0 %v2571_v16  ;;  %v1300_v3 = vsel %vm1252_vm3, %v777_v0, 0 }
 0x240   :  { %2345 = vmatpush3.bf16.xpose.msra.mxu1 %v1019_v49  ;;  %2346 = vmatprep.mubr.msk.bf16.mxu1 %vm2572_vm1, %v2571_v16 }
 0x241   :  { %2356 = vmatprep.subr.bf16.mxu1 %v2571_v16 }
 0x242   :  { %v2840_v51 = vpop.f32.mrb[24].mxu0 }
 0x243   :  { %v2304_v55 = vpop.f32.mrb[25].mxu0 }
 0x244   :  { %v2846_v56 = vpop.f32.mrb[26].mxu0 }
 0x245   :  { %v2305_v60 = vpop.f32.mrb[27].mxu0  ;;  %2341 = vmatmul.mubr.msk.bf16.vlgmr.msra.gmra.mrb[36].mxu0 %vm784_vm2, %v764_v52 }
 0x246   :  { %2351 = vmatpush3.bf16.xpose.msra.mxu0 %v1065_v57  ;;  %2352 = vmatprep.mubr.msk.bf16.mxu0 %vm2572_vm1, %v2571_v16 }
 0x247   :  { %2347 = vmatmul.mubr.msk.bf16.vlgmr.msra.gmra.mrb[28].mxu1 %vm784_vm2, %v765_v59  ;;  %2362 = vmatprep.subr.bf16.mxu0 %v2571_v16 }
 0x248   :  { %2357 = vmatpush3.bf16.xpose.msra.mxu1 %v1111_v61  ;;  %2358 = vmatprep.mubr.msk.bf16.mxu1 %vm2572_vm1, %v2571_v16 }
 0x249   :  { %2368 = vmatprep.subr.bf16.mxu1 %v2571_v16 }
 0x24d   :  { %2353 = vmatmul.mubr.msk.bf16.vlgmr.msra.gmra.mrb[40].mxu0 %vm784_vm2, %v766_v63 }
 0x24e   :  { %2363 = vmatpush3.bf16.msra.mxu0 %v1254_v2  ;;  %2364 = vmatprep.mubr.msk.bf16.mxu0 %vm2572_vm1, %v2571_v16 }
 0x24f   :  { %2359 = vmatmul.mubr.msk.bf16.vlgmr.msra.gmra.mrb[32].mxu1 %vm784_vm2, %v767_v1  ;;  %2374 = vmatprep.subr.bf16.mxu0 %v2571_v16 }
 0x250   :  { %2369 = vmatpush3.bf16.msra.mxu1 %v1300_v3  ;;  %2370 = vmatprep.mubr.msk.bf16.mxu1 %vm2572_vm1, %v2571_v16 }
 0x251   :  { %2380 = vmatprep.subr.bf16.mxu1 %v2571_v16 }
 0x308   :  { %v825_v58 = vpop.f32.mrb[28].mxu0 }
 0x309   :  { %v826_v4 = vadd.f32 %v825_v58, %v33_v54  ;;  %v2318_v5 = vpop.f32.mrb[29].mxu0 }
 0x30a   :  { %v828_v6 = vpop.f32.mrb[30].mxu0  ;;  %v871_v7 = vpop.f32.mrb[20].mxu1 }
 0x30b   :  { %v872_v8 = vadd.f32 %v871_v7, %v33_v54  ;;  %v2319_v9 = vpop.f32.mrb[31].mxu0  ;;  %v2324_v10 = vpop.f32.mrb[21].mxu1  ;;  %v1153_v11 = vsel %vm784_vm2, %v826_v4, -inf }
 0x30c   :  { %v874_v12 = vpop.f32.mrb[22].mxu1  ;;  %1154 = vmax.xlane.f32.xlu0 %v1153_v11 }
 0x30d   :  { %v2325_v13 = vpop.f32.mrb[23].mxu1  ;;  %v1156_v15 = vsel %vm784_vm2, %v872_v8, -inf }
 0x30e   :  { %1157 = vmax.xlane.f32.xlu1 %v1156_v15 }
 0x310   :  { %v917_v17 = vpop.f32.mrb[32].mxu0 }
 0x311   :  { %v918_v18 = vadd.f32 %v917_v17, %v33_v54  ;;  %v2330_v19 = vpop.f32.mrb[33].mxu0 }
 0x312   :  { %v920_v21 = vpop.f32.mrb[34].mxu0  ;;  %v963_v22 = vpop.f32.mrb[24].mxu1 }
 0x313   :  { %v964_v23 = vadd.f32 %v963_v22, %v33_v54  ;;  %v2331_v24 = vpop.f32.mrb[35].mxu0  ;;  %v2336_v25 = vpop.f32.mrb[25].mxu1  ;;  %v1159_v26 = vsel %vm784_vm2, %v918_v18, -inf }
 0x314   :  { %v966_v27 = vpop.f32.mrb[26].mxu1  ;;  %1160 = vmax.xlane.f32.xlu0 %v1159_v26 }
 0x315   :  { %v2337_v29 = vpop.f32.mrb[27].mxu1  ;;  %v1162_v30 = vsel %vm784_vm2, %v964_v23, -inf }
 0x316   :  { %1163 = vmax.xlane.f32.xlu1 %v1162_v30 }
 0x318   :  { %v1009_v31 = vpop.f32.mrb[36].mxu0 }
 0x319   :  { %v1010_v32 = vadd.f32 %v1009_v31, %v33_v54  ;;  %v2342_v33 = vpop.f32.mrb[37].mxu0 }
 0x31a   :  { %v1012_v35 = vpop.f32.mrb[38].mxu0  ;;  %v1055_v36 = vpop.f32.mrb[28].mxu1 }
 0x31b   :  { %v1056_v37 = vadd.f32 %v1055_v36, %v33_v54  ;;  %v2343_v38 = vpop.f32.mrb[39].mxu0  ;;  %v2348_v39 = vpop.f32.mrb[29].mxu1  ;;  %v1165_v40 = vsel %vm784_vm2, %v1010_v32, -inf }
 0x31c   :  { %v1058_v41 = vpop.f32.mrb[30].mxu1  ;;  %1166 = vmax.xlane.f32.xlu0 %v1165_v40 }
 0x31d   :  { %v2349_v42 = vpop.f32.mrb[31].mxu1  ;;  %v1168_v43 = vsel %vm784_vm2, %v1056_v37, -inf }
 0x31e   :  { %1169 = vmax.xlane.f32.xlu1 %v1168_v43 }
 0x320   :  { %v1101_v44 = vpop.f32.mrb[40].mxu0 }
 0x321   :  { %v1102_v45 = vadd.f32 %v1101_v44, %v33_v54  ;;  %v2354_v46 = vpop.f32.mrb[41].mxu0  ;;  %v778_v44 = vpack.c.bf16 %v2802_v14, %v2802_v14 }
 0x322   :  { %v1104_v47 = vpop.f32.mrb[42].mxu0  ;;  %v1147_v48 = vpop.f32.mrb[32].mxu1 }
 0x323   :  { %v1148_v49 = vadd.f32 %v1147_v48, %v33_v54  ;;  %v2355_v50 = vpop.f32.mrb[43].mxu0  ;;  %v2360_v52 = vpop.f32.mrb[33].mxu1  ;;  %v1171_v53 = vsel %vm784_vm2, %v1102_v45, -inf  ;;  %v779_v47 = vpack.c.bf16 %v2804_v20, %v2804_v20 }
 0x324   :  { %v1150_v55 = vpop.f32.mrb[34].mxu1  ;;  %1172 = vmax.xlane.f32.xlu0 %v1171_v53  ;;  %v1346_v50 = vsel %vm1252_vm3, %v778_v44, 0 }
 0x325   :  { %v2361_v57 = vpop.f32.mrb[35].mxu1  ;;  %v1174_v59 = vsel %vm784_vm2, %v1148_v49, -inf  ;;  %v1392_v14 = vsel %vm1252_vm3, %v779_v47, 0 }
 0x326   :  { %1175 = vmax.xlane.f32.xlu1 %v1174_v59  ;;  %v780_v57 = vpack.c.bf16 %v2840_v51, %v2840_v51 }
 0x399   :  { %v1155_v60 = vpop.xlane.xlu0 %1154 }
 0x39a   :  { %v1177_v61 = vsub.f32 %v826_v4, %v1155_v60 }
 0x39b   :  { %v1158_v62 = vpop.xlane.xlu1 %1157 }
 0x39c   :  { %v1185_v63 = vmul.f32 1.442695, %v1177_v61  ;;  %v1178_v0 = vsub.f32 %v872_v8, %v1158_v62  ;;  %v781_v61 = vpack.c.bf16 %v2846_v56, %v2846_v56 }
 0x39e   :  { %2505 = vpow2.f32 %v1185_v63  ;;  %v1187_v1 = vmul.f32 1.442695, %v1178_v0  ;;  %v1438_v0 = vsel %vm1252_vm3, %v780_v57, 0  ;;  %v1484_v51 = vsel %vm1252_vm3, %v781_v61, 0 }
 0x3a0   :  { %2507 = vpow2.f32 %v1187_v1 }
 0x3a1   :  { %v1161_v2 = vpop.xlane.xlu0 %1160 }
 0x3a2   :  { %v1179_v3 = vsub.f32 %v918_v18, %v1161_v2 }
 0x3a3   :  { %v1164_v54 = vpop.xlane.xlu1 %1163 }
 0x3a4   :  { %v1189_v58 = vmul.f32 1.442695, %v1179_v3  ;;  %v1180_v5 = vsub.f32 %v964_v23, %v1164_v54  ;;  %v782_v54 = vpack.c.bf16 %v2810_v28, %v2810_v28 }
 0x3a6   :  { %2509 = vpow2.f32 %v1189_v58  ;;  %v1191_v6 = vmul.f32 1.442695, %v1180_v5 }
 0x3a8   :  { %v2506_v7 = vpop.eup %2505  ;;  %2511 = vpow2.f32 %v1191_v6  ;;  %v783_v6 = vpack.c.bf16 %v2812_v34, %v2812_v34 }
 0x3a9   :  { %v1167_v9 = vpop.xlane.xlu0 %1166  ;;  %v1201_v10 = vsel %vm784_vm2, %v2506_v7, 0.0 }
 0x3aa   :  { %v2508_v11 = vpop.eup %2507  ;;  %v1181_v4 = vsub.f32 %v1010_v32, %v1167_v9  ;;  %1202 = vadd.xlane.f32.xlu0 %v1201_v10  ;;  %v1530_v10 = vsel %vm1252_vm3, %v782_v54, 0  ;;  %v1576_v28 = vsel %vm1252_vm3, %v783_v6, 0 }
 0x3ab   :  { %v1170_v12 = vpop.xlane.xlu1 %1169  ;;  %v1204_v8 = vsel %vm784_vm2, %v2508_v11, 0.0 }
 0x3ac   :  { %v1193_v13 = vmul.f32 1.442695, %v1181_v4  ;;  %v1182_v15 = vsub.f32 %v1056_v37, %v1170_v12  ;;  %1205 = vadd.xlane.f32.xlu1 %v1204_v8 }
 0x3ae   :  { %2513 = vpow2.f32 %v1193_v13  ;;  %v1195_v17 = vmul.f32 1.442695, %v1182_v15 }
 0x3b0   :  { %v2510_v18 = vpop.eup %2509  ;;  %2515 = vpow2.f32 %v1195_v17  ;;  %v1622_v17 = vld [vmem:[%s3078_s5] sm:$0xf] }
 0x3b1   :  { %v1173_v19 = vpop.xlane.xlu0 %1172  ;;  %v1207_v21 = vsel %vm784_vm2, %v2510_v18, 0.0 }
 0x3b2   :  { %v2512_v22 = vpop.eup %2511  ;;  %v1183_v23 = vsub.f32 %v1102_v45, %v1173_v19  ;;  %1208 = vadd.xlane.f32.xlu0 %v1207_v21  ;;  %v1623_v19 = vld [vmem:[%s3078_s5 + $0x4] sm:$0xf] }
 0x3b3   :  { %v1176_v24 = vpop.xlane.xlu1 %1175  ;;  %v1210_v25 = vsel %vm784_vm2, %v2512_v22, 0.0  ;;  %v1677_v21 = vsel %vm1252_vm3, %v1623_v19, 0 }
 0x3b4   :  { %v1197_v26 = vmul.f32 1.442695, %v1183_v23  ;;  %v1184_v27 = vsub.f32 %v1148_v49, %v1176_v24  ;;  %1211 = vadd.xlane.f32.xlu1 %v1210_v25  ;;  %v1624_v23 = vld [vmem:[%s3078_s5 + $0x8] sm:$0xf] }
 0x3b6   :  { %2517 = vpow2.f32 %v1197_v26  ;;  %v1199_v29 = vmul.f32 1.442695, %v1184_v27 }
 0x3b8   :  { %v2889_v30 = vpop.eup %2513  ;;  %2519 = vpow2.f32 %v1199_v29 }
 0x3b9   :  { %v1213_v31 = vsel %vm784_vm2, %v2889_v30, 0.0 }
 0x3ba   :  { %v2893_v32 = vpop.eup %2515  ;;  %1214 = vadd.xlane.f32.xlu0 %v1213_v31  ;;  %v1724_v31 = vsel %vm1252_vm3, %v1624_v23, 0 }
 0x3bb   :  { %v1216_v33 = vsel %vm784_vm2, %v2893_v32, 0.0 }
 0x3bc   :  { %1217 = vadd.xlane.f32.xlu1 %v1216_v33 }
 0x3c0   :  { %v2897_v35 = vpop.eup %2517 }
 0x3c1   :  { %v1219_v36 = vsel %vm784_vm2, %v2897_v35, 0.0 }
 0x3c2   :  { %v2901_v37 = vpop.eup %2519  ;;  %1220 = vadd.xlane.f32.xlu0 %v1219_v36  ;;  %v1625_v36 = vld [vmem:[%s3078_s5 + $0xc] sm:$0xf] }
 0x3c3   :  { %v1222_v38 = vsel %vm784_vm2, %v2901_v37, 0.0 }
 0x3c4   :  { %1223 = vadd.xlane.f32.xlu1 %v1222_v38 }
 0x437   :  { %v1203_v39 = vpop.xlane.xlu0 %1202 }
 0x438   :  { %2521 = vrcp.f32 %v1203_v39 }
 0x439   :  { %v1206_v40 = vpop.xlane.xlu1 %1205 }
 0x43a   :  { %2523 = vrcp.f32 %v1206_v40 }
 0x43f   :  { %v1209_v41 = vpop.xlane.xlu0 %1208 }
 0x440   :  { %2525 = vrcp.f32 %v1209_v41 }
 0x441   :  { %v1212_v42 = vpop.xlane.xlu1 %1211 }
 0x442   :  { %v2522_v43 = vpop.eup %2521  ;;  %2527 = vrcp.f32 %v1212_v42 }
 0x443   :  { %v1233_v45 = vmul.f32 %v2522_v43, %v2506_v7  ;;  %v1771_v43 = vsel %vm1252_vm3, %v1625_v36, 0 }
 0x444   :  { %v2524_v46 = vpop.eup %2523 }
 0x445   :  { %v1234_v48 = vmul.f32 %v2524_v46, %v2508_v11  ;;  %v1241_v49 = vpack.c.bf16 %v1233_v45, %v1233_v45 }
 0x447   :  { %2365 = vmatmul.mubr.msk.bf16.vlgmr.msra.gmra.mrb[44].mxu0 %vm784_vm2, %v1241_v49  ;;  %v1215_v52 = vpop.xlane.xlu0 %1214  ;;  %v1242_v53 = vpack.c.bf16 %v1234_v48, %v1234_v48 }
 0x448   :  { %2375 = vmatpush3.bf16.msra.mxu0 %v1346_v50  ;;  %2529 = vrcp.f32 %v1215_v52  ;;  %2376 = vmatprep.mubr.msk.bf16.mxu0 %vm2572_vm1, %v2571_v16 }
 0x449   :  { %v1218_v55 = vpop.xlane.xlu1 %1217  ;;  %2371 = vmatmul.mubr.msk.bf16.vlgmr.msra.gmra.mrb[36].mxu1 %vm784_vm2, %v1242_v53  ;;  %2386 = vmatprep.subr.bf16.mxu0 %v2571_v16 }
 0x44a   :  { %v2526_v20 = vpop.eup %2525  ;;  %2531 = vrcp.f32 %v1218_v55  ;;  %2381 = vmatpush3.bf16.msra.mxu1 %v1392_v14  ;;  %2382 = vmatprep.mubr.msk.bf16.mxu1 %vm2572_vm1, %v2571_v16 }
 0x44b   :  { %v1235_v59 = vmul.f32 %v2526_v20, %v2510_v18  ;;  %2392 = vmatprep.subr.bf16.mxu1 %v2571_v16  ;;  %v1630_v18 = vsel %vm1252_vm3, %v1622_v17, 0 }
 0x44c   :  { %v2528_v60 = vpop.eup %2527 }
 0x44d   :  { %v1236_v62 = vmul.f32 %v2528_v60, %v2512_v22  ;;  %v1243_v63 = vpack.c.bf16 %v1235_v59, %v1235_v59 }
 0x44f   :  { %2377 = vmatmul.mubr.msk.bf16.vlgmr.msra.gmra.mrb[48].mxu0 %vm784_vm2, %v1243_v63  ;;  %v1221_v1 = vpop.xlane.xlu0 %1220  ;;  %v1244_v2 = vpack.c.bf16 %v1236_v62, %v1236_v62 }
 0x450   :  { %2387 = vmatpush3.bf16.msra.mxu0 %v1438_v0  ;;  %2533 = vrcp.f32 %v1221_v1  ;;  %2388 = vmatprep.mubr.msk.bf16.mxu0 %vm2572_vm1, %v2571_v16 }
 0x451   :  { %v1224_v3 = vpop.xlane.xlu1 %1223  ;;  %2383 = vmatmul.mubr.msk.bf16.vlgmr.msra.gmra.mrb[40].mxu1 %vm784_vm2, %v1244_v2  ;;  %2398 = vmatprep.subr.bf16.mxu0 %v2571_v16 }
 0x452   :  { %v2530_v56 = vpop.eup %2529  ;;  %2535 = vrcp.f32 %v1224_v3  ;;  %2393 = vmatpush3.bf16.msra.mxu1 %v1484_v51  ;;  %2394 = vmatprep.mubr.msk.bf16.mxu1 %vm2572_vm1, %v2571_v16 }
 0x453   :  { %v1237_v58 = vmul.f32 %v2530_v56, %v2889_v30  ;;  %2404 = vmatprep.subr.bf16.mxu1 %v2571_v16 }
 0x454   :  { %v2532_v5 = vpop.eup %2531 }
 0x455   :  { %v1238_v7 = vmul.f32 %v2532_v5, %v2893_v32  ;;  %v1245_v9 = vpack.c.bf16 %v1237_v58, %v1237_v58 }
 0x457   :  { %2389 = vmatmul.mubr.msk.bf16.vlgmr.msra.gmra.mrb[52].mxu0 %vm784_vm2, %v1245_v9  ;;  %v1246_v11 = vpack.c.bf16 %v1238_v7, %v1238_v7 }
 0x458   :  { %2399 = vmatpush3.bf16.msra.mxu0 %v1530_v10  ;;  %2400 = vmatprep.mubr.msk.bf16.mxu0 %vm2572_vm1, %v2571_v16 }
 0x459   :  { %2395 = vmatmul.mubr.msk.bf16.vlgmr.msra.gmra.mrb[44].mxu1 %vm784_vm2, %v1246_v11  ;;  %2410 = vmatprep.subr.bf16.mxu0 %v2571_v16 }
 0x45a   :  { %v2534_v4 = vpop.eup %2533  ;;  %2405 = vmatpush3.bf16.msra.mxu1 %v1576_v28  ;;  %2406 = vmatprep.mubr.msk.bf16.mxu1 %vm2572_vm1, %v2571_v16 }
 0x45b   :  { %v1239_v34 = vmul.f32 %v2534_v4, %v2897_v35  ;;  %2416 = vmatprep.subr.bf16.mxu1 %v2571_v16 }
 0x45c   :  { %v2536_v12 = vpop.eup %2535 }
 0x45d   :  { %v1240_v8 = vmul.f32 %v2536_v12, %v2901_v37  ;;  %v1247_v13 = vpack.c.bf16 %v1239_v34, %v1239_v34 }
 0x45f   :  { %2401 = vmatmul.mubr.msk.bf16.vlgmr.msra.gmra.mrb[56].mxu0 %vm784_vm2, %v1247_v13  ;;  %v1248_v15 = vpack.c.bf16 %v1240_v8, %v1240_v8 }
 0x460   :  { %2412 = vmatprep.mubr.msk.bf16.mxu0 %vm2572_vm1, %v2571_v16  ;;  %2411 = vmatpush3.bf16.msra.mxu0 %v1630_v18 }
 0x461   :  { %2407 = vmatmul.mubr.msk.bf16.vlgmr.msra.gmra.mrb[48].mxu1 %vm784_vm2, %v1248_v15  ;;  %2422 = vmatprep.subr.bf16.mxu0 %v2571_v16 }
 0x462   :  { %2418 = vmatprep.mubr.msk.bf16.mxu1 %vm2572_vm1, %v2571_v16  ;;  %2417 = vmatpush3.bf16.msra.mxu1 %v1677_v21 }
 0x463   :  { %2428 = vmatprep.subr.bf16.mxu1 %v2571_v16 }
 0x51a   :  { %v1290_v22 = vpop.f32.mrb[44].mxu0 }
 0x51b   :  { %v2366_v24 = vpop.f32.mrb[45].mxu0 }
 0x51c   :  { %v1293_v25 = vpop.f32.mrb[46].mxu0  ;;  %v1336_v26 = vpop.f32.mrb[36].mxu1 }
 0x51d   :  { %v1618_v27 = vpack.c.bf16 %v1336_v26, %v1290_v22  ;;  %v2367_v29 = vpop.f32.mrb[47].mxu0  ;;  %v2372_v30 = vpop.f32.mrb[37].mxu1 }
 0x51e   :  { %v1339_v32 = vpop.f32.mrb[38].mxu1  ;;  %v2545_v29 = vld [vmem:[%s3073_s0] sm:$0xff] }
 0x51f   :  { %v2373_v33 = vpop.f32.mrb[39].mxu1  ;;  %2413 = vmatmul.mubr.msk.bf16.vlgmr.msra.gmra.mrb[60].mxu0 %vm784_vm2, %v1618_v27  ;;  %v2546_v32 = vld [vmem:[%s3073_s0 + $0x8] sm:$0xff] }
 0x520   :  { %2423 = vmatpush3.bf16.msra.mxu0 %v1724_v31  ;;  %2424 = vmatprep.mubr.msk.bf16.mxu0 %vm2572_vm1, %v2571_v16 }
 0x521   :  { %2434 = vmatprep.subr.bf16.mxu0 %v2571_v16 }
 0x522   :  { %v1382_v35 = vpop.f32.mrb[48].mxu0 }
 0x523   :  { %v2378_v37 = vpop.f32.mrb[49].mxu0 }
 0x524   :  { %v1385_v38 = vpop.f32.mrb[50].mxu0  ;;  %v1428_v39 = vpop.f32.mrb[40].mxu1 }
 0x525   :  { %v1619_v40 = vpack.c.bf16 %v1428_v39, %v1382_v35  ;;  %v2379_v41 = vpop.f32.mrb[51].mxu0  ;;  %v2384_v42 = vpop.f32.mrb[41].mxu1 }
 0x526   :  { %v1431_v44 = vpop.f32.mrb[42].mxu1 }
 0x527   :  { %v2385_v45 = vpop.f32.mrb[43].mxu1  ;;  %2419 = vmatmul.mubr.msk.bf16.vlgmr.msra.gmra.mrb[52].mxu1 %vm784_vm2, %v1619_v40 }
 0x528   :  { %2429 = vmatpush3.bf16.msra.mxu1 %v1771_v43  ;;  %2430 = vmatprep.mubr.msk.bf16.mxu1 %vm2572_vm1, %v2571_v16 }
 0x529   :  { %2442 = vmatprep.subr.bf16.mxu1 %v2571_v16 }
 0x52a   :  { %v1474_v46 = vpop.f32.mrb[52].mxu0 }
 0x52b   :  { %v2390_v47 = vpop.f32.mrb[53].mxu0 }
 0x52c   :  { %v1477_v48 = vpop.f32.mrb[54].mxu0  ;;  %v1520_v49 = vpop.f32.mrb[44].mxu1  ;;  %v2491_v47 = vld [vmem:[%s3079_s6] sm:$0xff]  }
 0x52d   :  { %v1620_v50 = vpack.c.bf16 %v1520_v49, %v1474_v46  ;;  %v2391_v52 = vpop.f32.mrb[55].mxu0  ;;  %v2396_v53 = vpop.f32.mrb[45].mxu1  ;;  %v2492_v48 = vld [vmem:[%s3079_s6 + $0x8] sm:$0xff]   ;;  %v2493_v49 = vld [vmem:[%s3080_s7] sm:$0xff]  }
 0x52e   :  { %v1523_v14 = vpop.f32.mrb[46].mxu1  ;;  %v2495_v52 = vld [vmem:[%s3080_s7 + $0x10] sm:$0xff]  }
 0x52f   :  { %v2397_v55 = vpop.f32.mrb[47].mxu1  ;;  %2425 = vmatmul.mubr.msk.bf16.vlgmr.msra.gmra.mrb[64].mxu0 %vm784_vm2, %v1620_v50  ;;  %v2494_v50 = vld [vmem:[%s3080_s7 + $0x8] sm:$0xff]  }
 0x530   :  { %2438 = vmatprep.mubr.msk.bf16.mxu0 %vm2572_vm1, %v2571_v16  ;;  %2435 = vmatpush3.bf16.msra.mxu0 %v2491_v47 }
 0x531   :  { %2436 = vmatprep.subr.bf16.mxu0 %v2571_v16 }
 0x532   :  { %v1566_v20 = vpop.f32.mrb[56].mxu0 }
 0x533   :  { %v2402_v57 = vpop.f32.mrb[57].mxu0 }
 0x534   :  { %v1569_v59 = vpop.f32.mrb[58].mxu0  ;;  %v1612_v60 = vpop.f32.mrb[48].mxu1  ;;  %2437 = vmatpush3.bf16.msra.mxu0 %v2492_v48 }
 0x535   :  { %v1621_v61 = vpack.c.bf16 %v1612_v60, %v1566_v20  ;;  %v2403_v62 = vpop.f32.mrb[59].mxu0  ;;  %v2408_v63 = vpop.f32.mrb[49].mxu1 }
 0x536   :  { %v1615_v0 = vpop.f32.mrb[50].mxu1  ;;  %v2118_v63 = vld [vmem:[%s3076_s3] ss:$0 sm:$0xff] }
 0x537   :  { %v2409_v1 = vpop.f32.mrb[51].mxu1  ;;  %2431 = vmatmul.mubr.msk.bf16.vlgmr.msra.gmra.mrb[56].mxu1 %vm784_vm2, %v1621_v61 }
 0x538   :  { %2458 = vmatprep.mubr.msk.bf16.mxu1 %vm2572_vm1, %v2571_v16  ;;  %2443 = vmatpush3.bf16.msra.mxu1 %v2493_v49 }
 0x539   :  { %2444 = vmatprep.subr.bf16.mxu1 %v2571_v16 }
 0x53c   :  { %2445 = vmatpush3.bf16.msra.mxu1 %v2494_v50 }
 0x53d   :  { %2446 = vmatprep.subr.bf16.mxu1 %v2571_v16 }
 0x540   :  { %2447 = vmatpush3.bf16.msra.mxu1 %v2495_v52 }
 0x541   :  { %2448 = vmatprep.subr.bf16.mxu1 %v2571_v16 }
 0x5f2   :  { %v1666_v2 = vpop.f32.mrb[60].mxu0 }
 0x5f3   :  { %v2414_v51 = vpop.f32.mrb[61].mxu0  ;;  %v1814_v58 = vsel %vm36_vm0, %v1666_v2, 0.0 }
 0x5f4   :  { %v1669_v3 = vpop.f32.mrb[62].mxu0 }
 0x5f5   :  { %v2415_v56 = vpop.f32.mrb[63].mxu0  ;;  %v1821_v10 = vsel %vm36_vm0, %v1669_v3, 0.0  ;;  %v2496_v3 = vld [vmem:[%s3080_s7 + $0x18] sm:$0xff]  }
 0x5f6   :  { %2449 = vmatpush3.bf16.msra.mxu1 %v2496_v3  ;;  %v2497_v56 = vld [vmem:[%s3080_s7 + $0x20] sm:$0xff]  }
 0x5f7   :  { %2450 = vmatprep.subr.bf16.mxu1 %v2571_v16 }
 0x5fa   :  { %v1713_v54 = vpop.f32.mrb[52].mxu1  ;;  %2451 = vmatpush3.bf16.msra.mxu1 %v2497_v56 }
 0x5fb   :  { %v1815_v5 = vsel %vm36_vm0, %v1713_v54, 0.0  ;;  %v2420_v6 = vpop.f32.mrb[53].mxu1  ;;  %2452 = vmatprep.subr.bf16.mxu1 %v2571_v16  ;;  %v2498_v54 = vld [vmem:[%s3080_s7 + $0x28] sm:$0xff]  }
 0x5fc   :  { %v1816_v7 = vadd.f32 %v1815_v5, %v1814_v58  ;;  %v1716_v9 = vpop.f32.mrb[54].mxu1  ;;  %v2499_v58 = vld [vmem:[%s3080_s7 + $0x30] sm:$0xff]   ;;  %v2500_v5 = vld [vmem:[%s3080_s7 + $0x38] sm:$0xff]   ;;  %s2573_s7 = smov [#allocation2]  }
 0x5fd   :  { %v1822_v11 = vsel %vm36_vm0, %v1716_v9, 0.0  ;;  %v2421_v28 = vpop.f32.mrb[55].mxu1  ;;  %s2050_s18 = sshll.u32 %s2573_s7, 4  ;;  %s2051_s18 = int_to_ptr.vmem [resolvable:$true] %s2050_s18 }
 0x5fe   :  { %v1823_v4 = vadd.f32 %v1822_v11, %v1821_v10  ;;  %2453 = vmatpush3.bf16.msra.mxu1 %v2498_v54  ;;  %s2547_s19 = scalar_lea.vmem %s2051_s18, 256  ;;  %p2552_p1 = scmp.lt.s32.totalorder %s2051_s18, %s2051_s18 }
 0x5ff   :  { %2454 = vmatprep.subr.bf16.mxu1 %v2571_v16  ;;  %p2548_p0 = scmp.ne.s32.totalorder %s2051_s18, %s2547_s19  ;;  %p2553_p2 = scmp.lt.s32.totalorder %s2547_s19, %s2547_s19 }
 0x601   :  { %p2554_p3 = por %p2553_p2, %p2552_p1 }
 0x602   :  { %v1760_v34 = vpop.f32.mrb[64].mxu0  ;;  %2455 = vmatpush3.bf16.msra.mxu1 %v2499_v58 }
 0x603   :  { %v1817_v12 = vsel %vm36_vm0, %v1760_v34, 0.0  ;;  %v2426_v8 = vpop.f32.mrb[65].mxu0  ;;  %2456 = vmatprep.subr.bf16.mxu1 %v2571_v16  ;;  %p2555_p4 = pnand %p2554_p3, %p2548_p0 }
 0x604   :  { %v1818_v13 = vadd.f32 %v1817_v12, %v1816_v7  ;;  %v1763_v15 = vpop.f32.mrb[66].mxu0 }
 0x605   :  { %v1824_v17 = vsel %vm36_vm0, %v1763_v15, 0.0  ;;  %v2427_v18 = vpop.f32.mrb[67].mxu0 }
 0x606   :  { %v1825_v19 = vadd.f32 %v1824_v17, %v1823_v4  ;;  %2457 = vmatpush3.bf16.msra.mxu1 %v2500_v5 }
 0x60a   :  { %v1807_v21 = vpop.f32.mrb[56].mxu1 }
 0x60b   :  { %v1819_v22 = vsel %vm36_vm0, %v1807_v21, 0.0  ;;  %v2432_v23 = vpop.f32.mrb[57].mxu1 }
 0x60c   :  { %v1820_v24 = vadd.f32 %v1819_v22, %v1818_v13  ;;  %v1810_v25 = vpop.f32.mrb[58].mxu1 }
 0x60d   :  { %v1826_v26 = vsel %vm36_vm0, %v1810_v25, 0.0  ;;  %v2433_v27 = vpop.f32.mrb[59].mxu1 }
 0x60e   :  { %v3000_v30 = vadd.f32 %v2545_v29, %v1820_v24  ;;  %v1827_v31 = vadd.f32 %v1826_v26, %v1825_v19 }
 0x610   :  { %v3005_v33 = vadd.f32 %v2546_v32, %v1827_v31  ;;  %v1830_v35 = vsel %vm36_vm0, %v3000_v30, 0.0 }
 0x611   :  { %1831 = vadd.xlane.f32.xlu0 %v1830_v35 }
 0x612   :  { %v1833_v36 = vsel %vm36_vm0, %v3005_v33, 0.0 }
 0x613   :  { %1834 = vadd.xlane.f32.xlu1 %v1833_v36 }
 0x69e   :  { %v1832_v37 = vpop.xlane.xlu0 %1831 }
 0x69f   :  { %v1836_v38 = vmul.f32 0.03125, %v1832_v37 }
 0x6a0   :  { %v1835_v39 = vpop.xlane.xlu1 %1834 }
 0x6a1   :  { %v1838_v40 = vsub.f32 %v3000_v30, %v1836_v38  ;;  %v1837_v41 = vmul.f32 0.03125, %v1835_v39 }
 0x6a3   :  { %v1839_v42 = vsub.f32 %v3005_v33, %v1837_v41  ;;  %v1840_v43 = vmul.f32 %v1838_v40, %v1838_v40 }
 0x6a5   :  { %v1842_v44 = vsel %vm36_vm0, %v1840_v43, 0.0  ;;  %v1841_v45 = vmul.f32 %v1839_v42, %v1839_v42 }
 0x6a6   :  { %1843 = vadd.xlane.f32.xlu0 %v1842_v44 }
 0x6a7   :  { %v1845_v46 = vsel %vm36_vm0, %v1841_v45, 0.0 }
 0x6a8   :  { %1846 = vadd.xlane.f32.xlu1 %v1845_v46 }
 0x733   :  { %v1844_v53 = vpop.xlane.xlu0 %1843 }
 0x734   :  { %v1848_v14 = vmul.f32 0.03125, %v1844_v53 }
 0x735   :  { %v1847_v55 = vpop.xlane.xlu1 %1846 }
 0x736   :  { %v1850_v20 = vadd.f32 1e-05, %v1848_v14  ;;  %v1849_v57 = vmul.f32 0.03125, %v1847_v55 }
 0x738   :  { %2537 = vrsqrt.f32 %v1850_v20  ;;  %v1851_v59 = vadd.f32 1e-05, %v1849_v57 }
 0x73a   :  { %2539 = vrsqrt.f32 %v1851_v59 }
 0x742   :  { %v2538_v60 = vpop.eup %2537 }
 0x743   :  { %v1854_v61 = vmul.f32 %v2538_v60, %v1838_v40 }
 0x744   :  { %v2540_v62 = vpop.eup %2539 }
 0x745   :  { %v1855_v0 = vmul.f32 %v2540_v62, %v1839_v42  ;;  %v1862_v1 = vmul.f32 %v2118_v63, %v1854_v61 }
 0x747   :  { %v1863_v2 = vmul.f32 %v2118_v63, %v1855_v0 }
 0x749   :  { %v1864_v51 = vpack.c.bf16 %v1863_v2, %v1862_v1 }
 0x74b   :  { %2439 = vmatmul.mubr.msk.bf16.vlgmr.msra.gmra.mrb[68].mxu0 %vm36_vm0, %v1864_v51 }
 0x81e   :  { %v1918_v6 = vpop.f32.mrb[68].mxu0 }
 0x81f   :  { %v1927_v7 = vmul.f32 0.70710677, %v1918_v6  ;;  %v2440_v9 = vpop.f32.mrb[69].mxu0  ;;  %v1925_v8 = vmul.f32 0.5, %v1918_v6 }
 0x820   :  { %v1921_v10 = vpop.f32.mrb[70].mxu0 }
 0x821   :  { %2541 = verf.f32 %v1927_v7  ;;  %v1928_v11 = vmul.f32 0.70710677, %v1921_v10  ;;  %v2441_v28 = vpop.f32.mrb[71].mxu0  ;;  %v1926_v13 = vmul.f32 0.5, %v1921_v10 }
 0x823   :  { %2543 = verf.f32 %v1928_v11 }
 0x82b   :  { %v2542_v4 = vpop.eup %2541 }
 0x82c   :  { %v1931_v34 = vadd.f32 1.0, %v2542_v4 }
 0x82d   :  { %v2544_v12 = vpop.eup %2543 }
 0x82e   :  { %v1932_v15 = vadd.f32 1.0, %v2544_v12  ;;  %v1933_v16 = vmul.f32 %v1931_v34, %v1925_v8 }
 0x830   :  { %v1934_v17 = vmul.f32 %v1932_v15, %v1926_v13 }
 0x832   :  { %v1935_v18 = vpack.c.bf16 %v1934_v17, %v1933_v16 }
 0x834   :  { %2459 = vmatmul.mubr.bf16.vlgmr.msra.gmra.mrb[60].mxu1 %v1935_v18 }
 0x907   :  { %v2034_v19 = vpop.f32.mrb[60].mxu1 }
 0x908   :  { %v2041_v21 = vadd.f32 %v2034_v19, %v3000_v30  ;;  %v2460_v22 = vpop.f32.mrb[61].mxu1 }
 0x909   :  { %v2037_v23 = vpop.f32.mrb[62].mxu1 }
 0x90a   :  { %2043 = vst.msk [vmem:[#allocation2] sm:$0xff] %vm36_vm0, %v2041_v21  ;;  %v2042_v24 = vadd.f32 %v2037_v23, %v3005_v33  ;;  %v2461_v25 = vpop.f32.mrb[63].mxu1 }
 0x90c   :  { %2044 = vst.msk [vmem:[#allocation2 + $0x8] sm:$0xff] %vm36_vm0, %v2042_v24 }
 0x90d   :  { %2558 = shalt.err (!%p2555_p4)
}
 0x90e   :  { %s2559_s21 = scalar_lea.hbm %s3081_s8, 256 }
 0x90f   :  { %p2560_p5 = scmp.ne.s32.totalorder %s3081_s8, %s2559_s21  ;;  %p2563_p6 = scmp.lt.u32.totalorder %s2559_s21, %s3081_s8 }
 0x911   :  { %p2565_p7 = pnand %p2563_p6, %p2560_p5 }
 0x913   :  { %2568 = shalt.err (!%p2565_p7)
}
 0x914   :  { %s2574_s24 = smov 128   ;;  %s2575_s25 = smov 8  }
 0x915   :  { %2056 = dma.vmem_to_hbm [thread:$0]  %s2051_s18, 256, %s3081_s8, [#allocation3], %s2574_s24, %s2574_s24, %s2575_s25  }
 0x916   :  { %2569 = dma.done.wait [#allocation3], 256  }
 0x917   :  { %2570 = vsyncadd [#allocation3], 4294967040 }
 0x918   :  { %2060 = vsyncpa [#allocation3], 1 }

</bundles_post_ra>
